<compile_context>
chip_gen: v5e
topology: v5e:2x2
jax: 0.10.0
libtpu: 0.0.40
codegen_flags: <defaults>
</compile_context>

<pallas_src>
import jax
import jax.numpy as jnp
from jax.experimental import pallas as pl
from jax.experimental.pallas import tpu as pltpu


def _sigmoid(z):
    # Numerically stable sigmoid, f32 elementwise (exp on the EUP, one divide).
    # Used both inside the kernel and in the references so they match tightly.
    # (pl.reciprocal(approx=True) could push the divide to the EUP; kept exact here —
    #  at these sizes the divide is hidden behind the matmuls anyway.)
    e = jnp.exp(-jnp.abs(z))
    inv = 1.0 / (1.0 + e)
    return jnp.where(z >= 0, inv, e * inv)


def gru_cell_kernel(w_ref, wch_ref, xh_ref, out_ref):
    # w_ref  : (3E, Kp) bf16  stacked [[Wr_x Wr_h br 0],[Wu_x Wu_h bu 0],[Wc_x 0 bc 0]]
    # wch_ref: (E, E)   bf16  Wc_h
    # xh_ref : (Kp, tf) bf16  stacked [x; h; 1; 0]
    # out_ref: (E, tf)  f32
    E = wch_ref.shape[0]
    xh = xh_ref[...]
    h = xh[E:2 * E].astype(jnp.float32)          # f32 copy of h for elementwise math

    # One stacked MXU matmul covers Wr/Wu/Wc x-side, Wr/Wu h-side and all three biases.
    g = jnp.dot(w_ref[...], xh, preferred_element_type=jnp.float32)   # (3E, tf) f32

    r = _sigmoid(g[0:E])
    u = _sigmoid(g[E:2 * E])

    # Candidate state needs r first, so its h-side matmul stays separate.
    gc = jnp.dot(wch_ref[...], (r * h).astype(wch_ref.dtype),
                 preferred_element_type=jnp.float32)                  # (E, tf) f32
    c = jnp.tanh(g[2 * E:3 * E] + gc)

    # u*h + (1-u)*c == c + u*(h - c): one fewer vmul; single fused store per tile.
    out_ref[...] = c + u * (h - c)


def pack_gru_params(params, compute_dtype=jnp.bfloat16):
    """Stack / pad / cast the gate weights ONCE (hoist this out of any time loop).

    Returns (W_big, Wc_h):
      W_big : (3E, Kp) compute_dtype, rows = [r; u; c] gates, columns = [x | h | bias | 0]
      Wc_h  : (E, E)   compute_dtype
    """
    Wr_x, Wr_h, br, Wu_x, Wu_h, bu, Wc_x, Wc_h, bc = [
        jnp.asarray(p, jnp.float32) for p in params
    ]
    E = Wr_x.shape[0]
    K = 2 * E + 1                       # [x | h | ones] contraction
    Kp = ((K + 15) // 16) * 16          # pad K to a multiple of 16 (bf16 sublane packing)

    zeros_E = jnp.zeros((E, E), jnp.float32)
    w_big = jnp.concatenate(
        [
            jnp.concatenate([Wr_x, Wr_h, br], axis=1),
            jnp.concatenate([Wu_x, Wu_h, bu], axis=1),
            jnp.concatenate([Wc_x, zeros_E, bc], axis=1),
        ],
        axis=0,
    )                                                       # (3E, 2E+1)
    w_big = jnp.pad(w_big, ((0, 0), (0, Kp - K)))           # (3E, Kp), zero K-padding
    return w_big.astype(compute_dtype), Wc_h.astype(compute_dtype)


def _num_lane_tiles(F):
    # Each grid step costs ~0.35 us of fixed overhead, so: one big tile for modest F
    # (block == full dims -> no padding / divisibility constraints); exactly two
    # lane-dense halves (one per v7x TensorCore) only when F is large and divisible.
    if F >= 4096 and F % 256 == 0:
        return 2
    return 1


@jax.jit
def gru_cell_forward(packed, features_t_0, hidden_state_t_1):
    """One GRU_Cell step. `packed` comes from pack_gru_params (reuse across steps)."""
    w_big, wch = packed
    E = wch.shape[0]
    Kp = w_big.shape[1]
    cdt = w_big.dtype

    x = jnp.asarray(features_t_0)
    h = jnp.asarray(hidden_state_t_1)
    F = x.shape[1]

    # Single streamed operand [x; h; 1; 0] in bf16 (one DMA stream, bias row folded in,
    # zero rows hit zero weight columns so they are inert).
    xh = jnp.concatenate(
        [x.astype(cdt), h.astype(cdt),
         jnp.ones((1, F), cdt), jnp.zeros((Kp - 2 * E - 1, F), cdt)],
        axis=0,
    )                                                       # (Kp, F)

    n_tiles = _num_lane_tiles(F)
    tf = F // n_tiles

    out = pl.pallas_call(
        gru_cell_kernel,
        out_shape=jax.ShapeDtypeStruct((E, F), jnp.float32),
        grid=(n_tiles,),
        in_specs=[
            pl.BlockSpec((3 * E, Kp), lambda j: (0, 0)),    # W_big (resident)
            pl.BlockSpec((E, E), lambda j: (0, 0)),         # Wc_h  (resident)
            pl.BlockSpec((Kp, tf), lambda j: (0, j)),       # [x;h;1] tile (streamed)
        ],
        out_specs=pl.BlockSpec((E, tf), lambda j: (0, j)),
        compiler_params=pltpu.CompilerParams(
            dimension_semantics=("parallel",),              # 2-way megacore only if n_tiles==2
        ),
    )(w_big, wch, xh)
    return out


def reference_forward(params, x, h):
    """Exact f32 mirror of the PyTorch GRU_Cell.forward."""
    Wr_x, Wr_h, br, Wu_x, Wu_h, bu, Wc_x, Wc_h, bc = params
    r = _sigmoid(Wr_x @ x + Wr_h @ h + br)
    u = _sigmoid(Wu_x @ x + Wu_h @ h + bu)
    c = jnp.tanh(Wc_x @ x + Wc_h @ (r * h) + bc)
    return u * h + (1.0 - u) * c


def reference_forward_mixed(packed, x, h):
    """Pure-JAX mirror of the kernel's exact numerics (bf16 matmul operands, f32 acc)."""
    w_big, wch = packed
    E = wch.shape[0]
    Kp = w_big.shape[1]
    cdt = w_big.dtype
    F = x.shape[1]
    xh = jnp.concatenate(
        [x.astype(cdt), h.astype(cdt),
         jnp.ones((1, F), cdt), jnp.zeros((Kp - 2 * E - 1, F), cdt)],
        axis=0,
    )
    hf = xh[E:2 * E].astype(jnp.float32)
    g = jnp.dot(w_big, xh, preferred_element_type=jnp.float32)
    r = _sigmoid(g[0:E])
    u = _sigmoid(g[E:2 * E])
    c = jnp.tanh(g[2 * E:3 * E] +
                 jnp.dot(wch, (r * hf).astype(cdt), preferred_element_type=jnp.float32))
    return c + u * (hf - c)


if __name__ == "__main__":
    E = 16    # nodes_dim (matches the module's square ExE gate weights)
    F = 256   # feature columns of x / h

    key = jax.random.PRNGKey(0)
    ks = jax.random.split(key, 11)

    # Deterministic randn-style parameters (same shapes as the PyTorch __init__).
    Wr_x = jax.random.normal(ks[0], (E, E), dtype=jnp.float32)
    Wr_h = jax.random.normal(ks[1], (E, E), dtype=jnp.float32)
    br = jax.random.normal(ks[2], (E, 1), dtype=jnp.float32)
    Wu_x = jax.random.normal(ks[3], (E, E), dtype=jnp.float32)
    Wu_h = jax.random.normal(ks[4], (E, E), dtype=jnp.float32)
    bu = jax.random.normal(ks[5], (E, 1), dtype=jnp.float32)
    Wc_x = jax.random.normal(ks[6], (E, E), dtype=jnp.float32)
    Wc_h = jax.random.normal(ks[7], (E, E), dtype=jnp.float32)
    bc = jax.random.normal(ks[8], (E, 1), dtype=jnp.float32)
    params = (Wr_x, Wr_h, br, Wu_x, Wu_h, bu, Wc_x, Wc_h, bc)

    x_t = jax.random.normal(ks[9], (E, F), dtype=jnp.float32)
    h_tm1 = jax.random.normal(ks[10], (E, F), dtype=jnp.float32)

    packed = pack_gru_params(params)        # one-off: reuse for every timestep
    h_t = gru_cell_forward(packed, x_t, h_tm1)
    jax.block_until_ready(h_t)
    assert h_t.shape == (E, F)

    # Tight check: kernel vs a pure-JAX mirror of the SAME mixed-precision math.
    ref_mixed = reference_forward_mixed(packed, x_t, h_tm1)
    assert jnp.allclose(h_t, ref_mixed, atol=5e-3, rtol=5e-3), "mismatch vs mixed-precision reference"

    # Loose check: kernel vs the exact f32 PyTorch-equivalent forward. Unscaled randn
    # weights give gate pre-activations with std ~ sqrt(2E+1) ~= 5.7, so bf16 operand
    # rounding is visible at the ~1e-2 level in the outputs.
    ref_f32 = reference_forward(params, x_t, h_tm1)
    assert jnp.allclose(h_t, ref_f32, atol=0.15, rtol=0.1), "mismatch vs f32 reference"

    print("KERNEL_OK")
</pallas_src>

<mosaic_0001>
module attributes {stable_mosaic.version = 11 : i64} {
  func.func @gru_cell_kernel(%arg0: i32, %arg1: memref<48x48xbf16, #tpu.memory_space<vmem>>, %arg2: memref<16x16xbf16, #tpu.memory_space<vmem>>, %arg3: memref<48x256xbf16, #tpu.memory_space<vmem>>, %arg4: memref<16x256xf32, #tpu.memory_space<vmem>>) attributes {dimension_semantics = [#tpu.dimension_semantics<parallel>], iteration_bounds = array<i64: 1>, scalar_prefetch = 0 : i64, scratch_operands = 0 : i64, tpu.core_type = #tpu.core_type<tc>, window_params = [{pipeline_mode = #tpu.pipeline_mode<synchronous>, transform_indices = @transform_0, window_bounds = array<i64: 48, 48>}, {pipeline_mode = #tpu.pipeline_mode<synchronous>, transform_indices = @transform_1, window_bounds = array<i64: 16, 16>}, {transform_indices = @transform_2, window_bounds = array<i64: 48, 256>}, {transform_indices = @transform_3, window_bounds = array<i64: 16, 256>}]} {
    %c0 = arith.constant 0 : index
    %c0_0 = arith.constant 0 : index
    %0 = vector.load %arg3[%c0, %c0_0] : memref<48x256xbf16, #tpu.memory_space<vmem>>, vector<48x256xbf16>
    %1 = vector.extract_strided_slice %0 {offsets = [16, 0], sizes = [16, 256], strides = [1, 1]} : vector<48x256xbf16> to vector<16x256xbf16>
    %2 = arith.extf %1 : vector<16x256xbf16> to vector<16x256xf32>
    %c0_1 = arith.constant 0 : index
    %c0_2 = arith.constant 0 : index
    %3 = vector.load %arg1[%c0_1, %c0_2] : memref<48x48xbf16, #tpu.memory_space<vmem>>, vector<48x48xbf16>
    %cst = arith.constant dense<0.000000e+00> : vector<48x256xf32>
    %4 = tpu.matmul %3, %0, %cst {dimension_numbers = #tpu.dot_dimension_numbers<[1], [0], [0], [1], [0, 0, 1, 1], [], []>} : vector<48x48xbf16>, vector<48x256xbf16>, vector<48x256xf32> -> vector<48x256xf32>
    %5 = vector.extract_strided_slice %4 {offsets = [0, 0], sizes = [16, 256], strides = [1, 1]} : vector<48x256xf32> to vector<16x256xf32>
    %6 = math.absf %5 : vector<16x256xf32>
    %cst_3 = arith.constant 0.000000e+00 : f32
    %7 = vector.broadcast %cst_3 : f32 to vector<16x256xf32>
    %8 = arith.subf %7, %6 : vector<16x256xf32>
    %9 = math.exp %8 : vector<16x256xf32>
    %cst_4 = arith.constant 1.000000e+00 : f32
    %10 = vector.broadcast %cst_4 : f32 to vector<16x256xf32>
    %11 = arith.addf %10, %9 : vector<16x256xf32>
    %cst_5 = arith.constant 1.000000e+00 : f32
    %12 = vector.broadcast %cst_5 : f32 to vector<16x256xf32>
    %13 = arith.divf %12, %11 : vector<16x256xf32>
    %cst_6 = arith.constant 0.000000e+00 : f32
    %14 = vector.broadcast %cst_6 : f32 to vector<16x256xf32>
    %15 = arith.cmpf oge, %5, %14 : vector<16x256xf32>
    %16 = arith.mulf %9, %13 : vector<16x256xf32>
    %17 = arith.select %15, %13, %16 : vector<16x256xi1>, vector<16x256xf32>
    %18 = vector.extract_strided_slice %4 {offsets = [16, 0], sizes = [16, 256], strides = [1, 1]} : vector<48x256xf32> to vector<16x256xf32>
    %19 = math.absf %18 : vector<16x256xf32>
    %cst_7 = arith.constant 0.000000e+00 : f32
    %20 = vector.broadcast %cst_7 : f32 to vector<16x256xf32>
    %21 = arith.subf %20, %19 : vector<16x256xf32>
    %22 = math.exp %21 : vector<16x256xf32>
    %cst_8 = arith.constant 1.000000e+00 : f32
    %23 = vector.broadcast %cst_8 : f32 to vector<16x256xf32>
    %24 = arith.addf %23, %22 : vector<16x256xf32>
    %cst_9 = arith.constant 1.000000e+00 : f32
    %25 = vector.broadcast %cst_9 : f32 to vector<16x256xf32>
    %26 = arith.divf %25, %24 : vector<16x256xf32>
    %cst_10 = arith.constant 0.000000e+00 : f32
    %27 = vector.broadcast %cst_10 : f32 to vector<16x256xf32>
    %28 = arith.cmpf oge, %18, %27 : vector<16x256xf32>
    %29 = arith.mulf %22, %26 : vector<16x256xf32>
    %30 = arith.select %28, %26, %29 : vector<16x256xi1>, vector<16x256xf32>
    %c0_11 = arith.constant 0 : index
    %c0_12 = arith.constant 0 : index
    %31 = vector.load %arg2[%c0_11, %c0_12] : memref<16x16xbf16, #tpu.memory_space<vmem>>, vector<16x16xbf16>
    %32 = arith.mulf %17, %2 : vector<16x256xf32>
    %33 = arith.truncf %32 : vector<16x256xf32> to vector<16x256xbf16>
    %cst_13 = arith.constant dense<0.000000e+00> : vector<16x256xf32>
    %34 = tpu.matmul %31, %33, %cst_13 {dimension_numbers = #tpu.dot_dimension_numbers<[1], [0], [0], [1], [0, 0, 1, 1], [], []>} : vector<16x16xbf16>, vector<16x256xbf16>, vector<16x256xf32> -> vector<16x256xf32>
    %35 = vector.extract_strided_slice %4 {offsets = [32, 0], sizes = [16, 256], strides = [1, 1]} : vector<48x256xf32> to vector<16x256xf32>
    %36 = arith.addf %35, %34 : vector<16x256xf32>
    %37 = math.tanh %36 : vector<16x256xf32>
    %38 = arith.subf %2, %37 : vector<16x256xf32>
    %39 = arith.mulf %30, %38 : vector<16x256xf32>
    %40 = arith.addf %37, %39 : vector<16x256xf32>
    %c0_14 = arith.constant 0 : index
    %c0_15 = arith.constant 0 : index
    %41 = vector.load %arg4[%c0_14, %c0_15] : memref<16x256xf32, #tpu.memory_space<vmem>>, vector<16x256xf32>
    tpu.vector_store %arg4[%c0_14, %c0_15], %40 {strides = array<i32>} : memref<16x256xf32, #tpu.memory_space<vmem>>, vector<16x256xf32>,
    return
  }
  func.func @transform_0(%arg0: i32) -> (i32, i32) {
    %c0_i32 = arith.constant 0 : i32
    %c0_i32_0 = arith.constant 0 : i32
    %c0_i32_1 = arith.constant 0 : i32
    return %c0_i32, %c0_i32_0 : i32, i32
  }
  func.func @transform_1(%arg0: i32) -> (i32, i32) {
    %c0_i32 = arith.constant 0 : i32
    %c0_i32_0 = arith.constant 0 : i32
    %c0_i32_1 = arith.constant 0 : i32
    return %c0_i32, %c0_i32_0 : i32, i32
  }
  func.func @transform_2(%arg0: i32) -> (i32, i32) {
    %c0_i32 = arith.constant 0 : i32
    %c0_i32_0 = arith.constant 0 : i32
    return %c0_i32, %arg0 : i32, i32
  }
  func.func @transform_3(%arg0: i32) -> (i32, i32) {
    %c0_i32 = arith.constant 0 : i32
    %c0_i32_0 = arith.constant 0 : i32
    return %c0_i32, %arg0 : i32, i32
  }
}

</mosaic_0001>

<bundles_post_ra>
// kernel: gru_cell_forward.1
= control target key start
LH: loop header
LB: loop body
LE: loop exit
PB: predicated region body
PF: predicated region fallthrough
CT: control target
= control target key end

     0   :  { %s779_s0 = inlined_call_operand.vmem [shape: bf16[48,48], index: 0, kind: input, shape index: {}]   ;;  %s780_s1 = inlined_call_operand.vmem [shape: bf16[16,16], index: 1, kind: input, shape index: {}]   ;;  %s781_s2 = inlined_call_operand.vmem [shape: bf16[48,256], index: 2, kind: input, shape index: {}]   ;;  %s782_s3 = inlined_call_operand.hbm [shape: f32[16,256], index: 3, kind: output, shape index: {}]  }
   0x1   :  { %v436_v0 = vld [vmem:[%s781_s2 + $0x20] sm:$0xf]  ;;  %v459_v1 = vld [vmem:[%s781_s2 + $0x24] sm:$0xf0]  ;;  %v458_v2 = vld [vmem:[%s781_s2 + $0x24] sm:$0xf] }
   0x2   :  { %v437_v3 = vor.u32 %v459_v1, %v436_v0  ;;  %v438_v4 = vld [vmem:[%s781_s2 + $0x28] sm:$0xf0]  ;;  %v428_v5 = vld [vmem:[%s781_s2 + $0x10] sm:$0xf]  ;;  %v457_v6 = vld [vmem:[%s781_s2 + $0x14] sm:$0xf0] }
   0x3   :  { %v441_v7 = vor.u32 %v458_v2, %v438_v4  ;;  %v456_v8 = vld [vmem:[%s781_s2 + $0x14] sm:$0xf]  ;;  %v430_v9 = vld [vmem:[%s781_s2 + $0x18] sm:$0xf0]  ;;  %v429_v10 = vor.u32 %v457_v6, %v428_v5  ;;  %v420_v12 = vld [vmem:[%s781_s2] sm:$0xf] }
   0x4   :  { %92 = vmatpush.bf16.msra.mxu0 %v437_v3  ;;  %464 = vmatpush.bf16.msra.mxu2 %v437_v3  ;;  %v433_v11 = vor.u32 %v456_v8, %v430_v9  ;;  %v455_v13 = vld [vmem:[%s781_s2 + $0x4] sm:$0xf0] }
   0x5   :  { %116 = vmatpush.bf16.msra.mxu1 %v441_v7  ;;  %467 = vmatpush.bf16.msra.mxu3 %v441_v7 }
   0x6   :  { %8 = vsyncpa [#allocation3], 0  ;;  %v454_v14 = vld [vmem:[%s781_s2 + $0x4] sm:$0xf]  ;;  %v422_v15 = vld [vmem:[%s781_s2 + $0x8] sm:$0xf0]  ;;  %v421_v16 = vor.u32 %v455_v13, %v420_v12 }
   0x7   :  { %v425_v17 = vor.u32 %v454_v14, %v422_v15  ;;  %v460_v18 = vld [vmem:[%s779_s0] sm:$0xff]  ;;  %vm77_vm0 = vcmask 392192   ;;  %v461_v19 = vld [vmem:[%s779_s0 + $0x8] sm:$0xff]  ;;  %v462_v20 = vld [vmem:[%s779_s0 + $0x10] sm:$0xff]  ;;  %s394_s22 = sshll.u32 %s782_s3, 4  ;;  %s540_s23 = smov 256   ;;  %s395_s22 = int_to_ptr.hbm [resolvable:$true] %s394_s22 }
   0x8   :  { %93 = vmatpush.bf16.msra.mxu0 %v429_v10  ;;  %465 = vmatpush.bf16.msra.mxu2 %v429_v10  ;;  %v642_v10 = vld [vmem:[%s781_s2 + $0x10] sm:$0xff]  ;;  %s541_s24 = smov 16  }
   0x9   :  { %117 = vmatpush.bf16.msra.mxu1 %v433_v11  ;;  %468 = vmatpush.bf16.msra.mxu3 %v433_v11  ;;  %v647_v11 = vld [vmem:[%s781_s2 + $0x18] sm:$0xff] }
   0xc   :  { %94 = vmatpush.bf16.msra.mxu0 %v421_v16  ;;  %466 = vmatpush.bf16.msra.mxu2 %v421_v16 }
   0xd   :  { %118 = vmatpush.bf16.msra.mxu1 %v425_v17  ;;  %469 = vmatpush.bf16.msra.mxu3 %v425_v17 }
   0xf   :  { %442 = vmatmul.msk.bf16.vlgmr.msra.gmra.mxu0 %vm77_vm0, %v460_v18  ;;  %444 = vmatmul.msk.bf16.vlgmr.msra.gmra.mxu2 %vm77_vm0, %v462_v20 }
  0x10   :  { %445 = vmatmul.msk.bf16.vlgmr.msra.gmra.mxu1 %vm77_vm0, %v460_v18  ;;  %447 = vmatmul.msk.bf16.vlgmr.msra.gmra.mxu3 %vm77_vm0, %v462_v20  ;;  %v22_v20 = vunpack.c.l.bf16 %v642_v10 }
  0x1f   :  { %443 = vmatmul.msk.bf16.gmra.mxu0 %vm77_vm0, %v461_v19 }
  0x20   :  { %446 = vmatmul.msk.bf16.gmra.mxu1 %vm77_vm0, %v461_v19 }
  0x8c   :  { %v607_v21 = vpop.f32.mrf.mxu0 }
  0x8d   :  { %v135_v22 = vand.u32 2147483647, %v607_v21  ;;  %v610_v23 = vpop.f32.mrf.mxu1  ;;  %vm215_vm9 = vcmp.ge.f32.partialorder %v607_v21, 0.0 }
  0x8e   :  { %v136_v24 = vand.u32 2147483647, %v610_v23 }
  0x8f   :  { %v139_v25 = vsub.f32 0.0, %v135_v22  ;;  %v24_v22 = vunpack.c.l.bf16 %v647_v11 }
  0x90   :  { %v140_v26 = vsub.f32 0.0, %v136_v24 }
  0x91   :  { %v143_v27 = vmul.f32 1.442695, %v139_v25 }
  0x92   :  { %v145_v28 = vmul.f32 1.442695, %v140_v26 }
  0x93   :  { %473 = vpow2.f32 %v143_v27 }
  0x94   :  { %475 = vpow2.f32 %v145_v28  ;;  %v613_v29 = vpop.f32.mrf.mxu0 }
  0x95   :  { %v137_v30 = vand.u32 2147483647, %v613_v29  ;;  %v616_v31 = vpop.f32.mrf.mxu1 }
  0x96   :  { %v138_v32 = vand.u32 2147483647, %v616_v31 }
  0x97   :  { %v141_v33 = vsub.f32 0.0, %v137_v30 }
  0x98   :  { %v142_v34 = vsub.f32 0.0, %v138_v32 }
  0x99   :  { %v474_v35 = vpop.eup %473  ;;  %v147_v36 = vmul.f32 1.442695, %v141_v33 }
  0x9a   :  { %v619_v37 = vpop.eup %475  ;;  %v151_v38 = vadd.f32 1.0, %v474_v35  ;;  %v149_v39 = vmul.f32 1.442695, %v142_v34 }
  0x9b   :  { %v152_v40 = vadd.f32 1.0, %v619_v37  ;;  %477 = vpow2.f32 %v147_v36  ;;  %v25_v36 = vunpack.c.h.bf16 %v647_v11 }
  0x9c   :  { %479 = vrcp.f32 %v151_v38  ;;  %v166_v52 = vand.u32 2147483648, %v151_v38  ;;  %vm160_vm2 = vweird.f32 %v151_v38  ;;  %v164_v55 = vand.u32 2147483647, %v151_v38 }
  0x9d   :  { %481 = vrcp.f32 %v152_v40  ;;  %v181_v59 = vand.u32 2147483648, %v152_v40  ;;  %vm175_vm5 = vweird.f32 %v152_v40  ;;  %v179_v62 = vand.u32 2147483647, %v152_v40 }
  0x9e   :  { %483 = vpow2.f32 %v149_v39  ;;  %v167_v61 = vor.u32 1.1754944e-38, %v166_v52  ;;  %vm165_vm6 = vcmp.eq.f32.partialorder %v164_v55, 8.507059e+37 }
  0x9f   :  { %v182_v6 = vor.u32 1.1754944e-38, %v181_v59  ;;  %vm180_vm10 = vcmp.eq.f32.partialorder %v179_v62, 8.507059e+37 }
  0xa1   :  { %v622_v41 = vpop.eup %477 }
  0xa2   :  { %v480_v42 = vpop.eup %479  ;;  %v153_v43 = vadd.f32 1.0, %v622_v41 }
  0xa3   :  { %v482_v44 = vpop.eup %481  ;;  %v156_v45 = vmul.f32 %v480_v42, %v151_v38  ;;  %vm161_vm1 = vweird.f32 %v480_v42 }
  0xa4   :  { %v625_v46 = vpop.eup %483  ;;  %v171_v47 = vmul.f32 %v482_v44, %v152_v40  ;;  %485 = vrcp.f32 %v153_v43  ;;  %vm162_vm3 = vmor %vm160_vm2, %vm161_vm1  ;;  %vm176_vm4 = vweird.f32 %v482_v44  ;;  %v196_v4 = vand.u32 2147483648, %v153_v43 }
  0xa5   :  { %v157_v48 = vsub.f32 1.0, %v156_v45  ;;  %v628_v49 = vadd.f32 1.0, %v625_v46  ;;  %vm631_vm7 = vmor %vm175_vm5, %vm176_vm4  ;;  %v194_v8 = vand.u32 2147483647, %v153_v43  ;;  %vm190_vm11 = vweird.f32 %v153_v43 }
  0xa6   :  { %v172_v50 = vsub.f32 1.0, %v171_v47  ;;  %v197_v16 = vor.u32 1.1754944e-38, %v196_v4  ;;  %vm216_vm1 = vcmp.ge.f32.partialorder %v610_v23, 0.0  ;;  %vm217_vm2 = vcmp.ge.f32.partialorder %v613_v29, 0.0 }
  0xa7   :  { %v158_v51 = vmul.f32 %v480_v42, %v157_v48  ;;  %487 = vrcp.f32 %v628_v49  ;;  %v211_v15 = vand.u32 2147483648, %v628_v49  ;;  %v209_v18 = vand.u32 2147483647, %v628_v49 }
  0xa8   :  { %v173_v53 = vmul.f32 %v482_v44, %v172_v50  ;;  %vm195_vm14 = vcmp.eq.f32.partialorder %v194_v8, 8.507059e+37  ;;  %vm205_vm15 = vweird.f32 %v628_v49  ;;  %vm218_vm4 = vcmp.ge.f32.partialorder %v616_v31, 0.0  ;;  %v677_v31 = vpop.f32.mrf.mxu1 }
  0xa9   :  { %v159_v54 = vadd.f32 %v480_v42, %v158_v51  ;;  %v212_v30 = vor.u32 1.1754944e-38, %v211_v15  ;;  %vm332_vm5 = vcmask 130048  }
  0xaa   :  { %v486_v56 = vpop.eup %485  ;;  %v174_v57 = vadd.f32 %v482_v44, %v173_v53 }
  0xab   :  { %v163_v58 = vsel %vm162_vm3, %v480_v42, %v159_v54  ;;  %v186_v60 = vmul.f32 %v486_v56, %v153_v43  ;;  %vm191_vm8 = vweird.f32 %v486_v56  ;;  %vm210_vm3 = vcmp.eq.f32.partialorder %v209_v18, 8.507059e+37  ;;  %v463_v42 = vld [vmem:[%s780_s1] sm:$0xff]  ;;  %s539_s1 = smov [#allocation2]  }
  0xac   :  { %v168_v2 = vsel %vm165_vm6, %v167_v61, %v163_v58  ;;  %v178_v3 = vsel %vm631_vm7, %v482_v44, %v174_v57  ;;  %vm192_vm12 = vmor %vm190_vm11, %vm191_vm8  ;;  %v675_v44 = vpop.f32.mrf.mxu0  ;;  %s392_s19 = sshll.u32 %s539_s1, 4  ;;  %s393_s19 = int_to_ptr.vmem [resolvable:$true] %s392_s19 }
  0xad   :  { %v488_v63 = vpop.eup %487  ;;  %v187_v1 = vsub.f32 1.0, %v186_v60  ;;  %v219_v12 = vmul.f32 %v474_v35, %v168_v2  ;;  %v183_v13 = vsel %vm180_vm10, %v182_v6, %v178_v3  ;;  %v23_v35 = vunpack.c.h.bf16 %v642_v10  ;;  %v106_v3 = vpop.f32.mrf.mxu2 }
  0xae   :  { %v201_v5 = vmul.f32 %v488_v63, %v628_v49  ;;  %vm206_vm13 = vweird.f32 %v488_v63  ;;  %v220_v24 = vmul.f32 %v619_v37, %v183_v13  ;;  %v227_v45 = vand.u32 2147483647, %v675_v44 }
  0xaf   :  { %v188_v7 = vmul.f32 %v486_v56, %v187_v1  ;;  %v223_v27 = vsel %vm215_vm9, %v168_v2, %v219_v12  ;;  %vm207_vm0 = vmor %vm205_vm15, %vm206_vm13 }
  0xb0   :  { %v202_v9 = vsub.f32 1.0, %v201_v5  ;;  %v224_v37 = vsel %vm216_vm1, %v183_v13, %v220_v24  ;;  %v321_v38 = vmul.f32 %v223_v27, %v22_v20  ;;  %v231_v47 = vsub.f32 0.0, %v227_v45  ;;  %v684_v52 = vpop.f32.mrf.mxu1 }
  0xb1   :  { %v189_v14 = vadd.f32 %v486_v56, %v188_v7  ;;  %v322_v40 = vmul.f32 %v224_v37, %v23_v35  ;;  %v230_v54 = vand.u32 2147483647, %v684_v52  ;;  %v130_v7 = vpop.f32.mrf.mxu3 }
  0xb2   :  { %v203_v17 = vmul.f32 %v488_v63, %v202_v9  ;;  %v235_v50 = vmul.f32 1.442695, %v231_v47 }
  0xb3   :  { %v193_v19 = vsel %vm192_vm12, %v486_v56, %v189_v14  ;;  %v234_v56 = vsub.f32 0.0, %v230_v54 }
  0xb4   :  { %v198_v25 = vsel %vm195_vm14, %v197_v16, %v193_v19  ;;  %v204_v26 = vadd.f32 %v488_v63, %v203_v17  ;;  %v681_v48 = vpop.f32.mrf.mxu0  ;;  %489 = vpow2.f32 %v235_v50 }
  0xb5   :  { %v221_v28 = vmul.f32 %v622_v41, %v198_v25  ;;  %v229_v51 = vand.u32 2147483647, %v681_v48  ;;  %v241_v59 = vmul.f32 1.442695, %v234_v56  ;;  %v108_v14 = vpop.f32.mrf.mxu2 }
  0xb6   :  { %v208_v32 = vsel %vm207_vm0, %v488_v63, %v204_v26 }
  0xb7   :  { %v225_v33 = vsel %vm217_vm2, %v198_v25, %v221_v28  ;;  %v213_v34 = vsel %vm210_vm3, %v212_v30, %v208_v32  ;;  %v233_v55 = vsub.f32 0.0, %v229_v51  ;;  %vm307_vm3 = vcmp.ge.f32.partialorder %v675_v44, 0.0 }
  0xb8   :  { %v222_v21 = vmul.f32 %v625_v46, %v213_v34  ;;  %v323_v39 = vmul.f32 %v225_v33, %v24_v22  ;;  %v228_v46 = vand.u32 2147483647, %v677_v31 }
  0xb9   :  { %v239_v57 = vmul.f32 1.442695, %v233_v55  ;;  %v711_v18 = vpop.f32.mrf.mxu3 }
  0xba   :  { %v226_v23 = vsel %vm218_vm4, %v213_v34, %v222_v21  ;;  %v325_v29 = vpack.c.bf16 %v323_v39, %v321_v38  ;;  %v232_v49 = vsub.f32 0.0, %v228_v46  ;;  %v687_v58 = vpop.eup %489 }
  0xbb   :  { %v324_v41 = vmul.f32 %v226_v23, %v25_v36  ;;  %v243_v61 = vadd.f32 1.0, %v687_v58 }
  0xbc   :  { %343 = vmatpush.bf16.msrb.mxu2 %v325_v29  ;;  %v237_v53 = vmul.f32 1.442695, %v232_v49 }
  0xbd   :  { %v326_v43 = vpack.c.bf16 %v324_v41, %v322_v40  ;;  %vm252_vm6 = vweird.f32 %v243_v61  ;;  %v258_v19 = vand.u32 2147483648, %v243_v61  ;;  %v256_v27 = vand.u32 2147483647, %v243_v61 }
  0xbe   :  { %491 = vpow2.f32 %v237_v53 }
  0xbf   :  { %357 = vmatpush.bf16.msrb.mxu3 %v326_v43  ;;  %452 = vmatmul.msk.bf16.vlgmr.msrb.gmra.mxu2 %vm332_vm5, %v463_v42  ;;  %493 = vpow2.f32 %v239_v57  ;;  %v259_v34 = vor.u32 1.1754944e-38, %v258_v19  ;;  %vm257_vm11 = vcmp.eq.f32.partialorder %v256_v27, 8.507059e+37 }
  0xc0   :  { %495 = vpow2.f32 %v241_v59 }
  0xc1   :  { %497 = vrcp.f32 %v243_v61 }
  0xc2   :  { %453 = vmatmul.msk.bf16.vlgmr.msrb.gmra.mxu3 %vm332_vm5, %v463_v42 }
  0xc4   :  { %v689_v60 = vpop.eup %491 }
  0xc5   :  { %v244_v62 = vadd.f32 1.0, %v689_v60  ;;  %v693_v63 = vpop.eup %493 }
  0xc6   :  { %v695_v0 = vpop.eup %495  ;;  %v698_v1 = vadd.f32 1.0, %v693_v63 }
  0xc7   :  { %499 = vrcp.f32 %v244_v62  ;;  %v498_v2 = vpop.eup %497  ;;  %v701_v4 = vadd.f32 1.0, %v695_v0  ;;  %vm267_vm9 = vweird.f32 %v244_v62  ;;  %v271_v32 = vand.u32 2147483647, %v244_v62 }
  0xc8   :  { %501 = vrcp.f32 %v698_v1  ;;  %v248_v6 = vmul.f32 %v498_v2, %v243_v61  ;;  %vm253_vm7 = vweird.f32 %v498_v2  ;;  %v273_v33 = vand.u32 2147483648, %v244_v62 }
  0xc9   :  { %503 = vrcp.f32 %v701_v4  ;;  %vm715_vm8 = vmor %vm252_vm6, %vm253_vm7  ;;  %vm726_vm13 = vcmp.eq.f32.partialorder %v271_v32, 8.507059e+37  ;;  %vm282_vm14 = vweird.f32 %v698_v1  ;;  %v288_v43 = vand.u32 2147483648, %v698_v1 }
  0xca   :  { %v249_v9 = vsub.f32 1.0, %v248_v6  ;;  %v274_v42 = vor.u32 1.1754944e-38, %v273_v33  ;;  %v286_v53 = vand.u32 2147483647, %v698_v1  ;;  %vm297_vm1 = vweird.f32 %v701_v4 }
  0xcb   :  { %v301_v57 = vand.u32 2147483647, %v701_v4  ;;  %v303_v59 = vand.u32 2147483648, %v701_v4  ;;  %v289_v61 = vor.u32 1.1754944e-38, %v288_v43  ;;  %vm308_vm6 = vcmp.ge.f32.partialorder %v677_v31, 0.0 }
  0xcc   :  { %v250_v16 = vmul.f32 %v498_v2, %v249_v9  ;;  %vm287_vm4 = vcmp.eq.f32.partialorder %v286_v53, 8.507059e+37 }
  0xcd   :  { %v500_v5 = vpop.eup %499  ;;  %vm302_vm7 = vcmp.eq.f32.partialorder %v301_v57, 8.507059e+37 }
  0xce   :  { %v263_v8 = vmul.f32 %v500_v5, %v244_v62  ;;  %v705_v12 = vpop.eup %501  ;;  %v251_v26 = vadd.f32 %v498_v2, %v250_v16  ;;  %vm268_vm10 = vweird.f32 %v500_v5 }
  0xcf   :  { %v707_v15 = vpop.eup %503  ;;  %v278_v17 = vmul.f32 %v705_v12, %v698_v1  ;;  %vm721_vm12 = vmor %vm267_vm9, %vm268_vm10  ;;  %vm283_vm15 = vweird.f32 %v705_v12  ;;  %vm310_vm9 = vcmp.ge.f32.partialorder %v684_v52, 0.0 }
  0xd0   :  { %v264_v13 = vsub.f32 1.0, %v263_v8  ;;  %v293_v25 = vmul.f32 %v707_v15, %v701_v4  ;;  %v255_v39 = vsel %vm715_vm8, %v498_v2, %v251_v26  ;;  %vm738_vm0 = vmor %vm282_vm14, %vm283_vm15  ;;  %vm298_vm2 = vweird.f32 %v707_v15 }
  0xd1   :  { %v279_v28 = vsub.f32 1.0, %v278_v17  ;;  %v260_v46 = vsel %vm257_vm11, %v259_v34, %v255_v39  ;;  %vm754_vm5 = vmor %vm297_vm1, %vm298_vm2  ;;  %vm309_vm8 = vcmp.ge.f32.partialorder %v681_v48, 0.0 }
  0xd2   :  { %v265_v24 = vmul.f32 %v500_v5, %v264_v13  ;;  %v294_v21 = vsub.f32 1.0, %v293_v25  ;;  %v311_v55 = vmul.f32 %v687_v58, %v260_v46 }
  0xd3   :  { %v280_v29 = vmul.f32 %v705_v12, %v279_v28 }
  0xd4   :  { %v266_v37 = vadd.f32 %v500_v5, %v265_v24  ;;  %v295_v49 = vmul.f32 %v707_v15, %v294_v21  ;;  %v315_v6 = vsel %vm307_vm3, %v260_v46, %v311_v55 }
  0xd5   :  { %v281_v51 = vadd.f32 %v705_v12, %v280_v29 }
  0xd6   :  { %v270_v47 = vsel %vm721_vm12, %v500_v5, %v266_v37  ;;  %v296_v62 = vadd.f32 %v707_v15, %v295_v49 }
  0xd7   :  { %v275_v56 = vsel %vm726_vm13, %v274_v42, %v270_v47 }
  0xd8   :  { %v312_v4 = vmul.f32 %v689_v60, %v275_v56  ;;  %v300_v13 = vsel %vm754_vm5, %v707_v15, %v296_v62 }
  0xda   :  { %v316_v60 = vsel %vm308_vm6, %v275_v56, %v312_v4 }
 0x142   :  { %v345_v38 = vpop.f32.mrf.mxu2 }
 0x143   :  { %v364_v40 = vadd.f32 %v345_v38, %v106_v3  ;;  %v285_v3 = vsel %vm738_vm0, %v705_v12, %v281_v51 }
 0x144   :  { %v290_v12 = vsel %vm287_vm4, %v289_v61, %v285_v3 }
 0x145   :  { %505 = vtanh.f32 %v364_v40  ;;  %v359_v45 = vpop.f32.mrf.mxu3 }
 0x146   :  { %v365_v50 = vadd.f32 %v359_v45, %v130_v7  ;;  %v304_v7 = vor.u32 1.1754944e-38, %v303_v59 }
 0x148   :  { %507 = vtanh.f32 %v365_v50  ;;  %v305_v19 = vsel %vm302_vm7, %v304_v7, %v300_v13 }
 0x149   :  { %v314_v15 = vmul.f32 %v695_v0, %v305_v19 }
 0x14a   :  { %v347_v1 = vpop.f32.mrf.mxu2 }
 0x14b   :  { %v506_v2 = vpop.eup %505  ;;  %v366_v5 = vadd.f32 %v347_v1, %v108_v14  ;;  %v318_v48 = vsel %vm310_vm9, %v305_v19, %v314_v15 }
 0x14c   :  { %v372_v44 = vsub.f32 %v22_v20, %v506_v2  ;;  %v313_v20 = vmul.f32 %v693_v63, %v290_v12 }
 0x14d   :  { %509 = vtanh.f32 %v366_v5  ;;  %v361_v8 = vpop.f32.mrf.mxu3 }
 0x14e   :  { %v508_v9 = vpop.eup %507  ;;  %v376_v16 = vmul.f32 %v372_v44, %v315_v6  ;;  %v367_v14 = vadd.f32 %v361_v8, %v711_v18  ;;  %v317_v27 = vsel %vm309_vm8, %v290_v12, %v313_v20 }
 0x14f   :  { %v373_v31 = vsub.f32 %v23_v35, %v508_v9 }
 0x150   :  { %v380_v17 = vadd.f32 %v506_v2, %v376_v16  ;;  %511 = vtanh.f32 %v367_v14 }
 0x151   :  { %v377_v24 = vmul.f32 %v373_v31, %v316_v60 }
 0x152   :  { %384 = vst [vmem:[#allocation2] sm:$0xff] %v380_v17 }
 0x153   :  { %v510_v25 = vpop.eup %509  ;;  %v381_v26 = vadd.f32 %v508_v9, %v377_v24 }
 0x154   :  { %v374_v18 = vsub.f32 %v24_v22, %v510_v25 }
 0x155   :  { %385 = vst [vmem:[#allocation2 + $0x8] sm:$0xff] %v381_v26 }
 0x156   :  { %v512_v10 = vpop.eup %511  ;;  %v378_v35 = vmul.f32 %v374_v18, %v317_v27 }
 0x157   :  { %v375_v63 = vsub.f32 %v25_v36, %v512_v10 }
 0x158   :  { %v382_v0 = vadd.f32 %v510_v25, %v378_v35 }
 0x159   :  { %v379_v28 = vmul.f32 %v375_v63, %v318_v48 }
 0x15a   :  { %386 = vst [vmem:[#allocation2 + $0x10] sm:$0xff] %v382_v0 }
 0x15b   :  { %v383_v22 = vadd.f32 %v512_v10, %v379_v28 }
 0x15d   :  { %387 = vst [vmem:[#allocation2 + $0x18] sm:$0xff] %v383_v22 }
 0x15e   :  { %400 = dma.vmem_to_hbm [thread:$0]  %s393_s19, 512, %s395_s22, [#allocation3], %s540_s23, %s540_s23, %s541_s24  }
 0x15f   :  { %537 = dma.done.wait [#allocation3], 512  }
 0x160   :  { %538 = vsyncadd [#allocation3], 4294966784 }
 0x161   :  { %405 = vsyncpa [#allocation3], 1 }

</bundles_post_ra>
